<compile_context>
chip_gen: v7x
topology: tpu7x:2x2x1
jax: 0.10.0
libtpu: 0.0.40
codegen_flags: <defaults>
</compile_context>

<pallas_src>
import jax
import jax.numpy as jnp
from jax.experimental import pallas as pl
from jax.experimental.pallas import tpu as pltpu


def _swish(x):
    # relu_fn in efficientnet-pytorch is Swish: x * sigmoid(x)
    return x * jax.nn.sigmoid(x)


# --------------------------- fused forward kernel ---------------------------
def _fused_kernel(patches_ref, w_taps_ref, w_head_ref, add_ref,
                  w_fc_ref, tail_ref, o_ref):
    # Layouts (channels on sublanes, spatial/batch on lanes):
    #   patches_ref : (9, M)           M = B*OH*OW
    #   w_taps_ref  : (C_stem, 9)
    #   w_head_ref  : (C_head, C_stem)
    #   add_ref     : (add_size, B)
    #   w_fc_ref    : (mid_fc, C_head + add_size)
    #   tail_ref    : (mid_fc, 3)      col0=b_fc, col1=w_last, col2=b_last
    #   o_ref       : (1, B)
    M = patches_ref.shape[1]
    B = add_ref.shape[1]
    S = M // B                                   # spatial positions per batch

    # ---- stem 3x3 / stride-2 conv (Cin=1) as one MXU matmul + swish --------
    feat = _swish(jnp.dot(w_taps_ref[...], patches_ref[...],
                          preferred_element_type=jnp.float32))   # (C_stem, M)

    # ---- 1x1 head conv + swish (MXU) ----------------------------------------
    y = _swish(jnp.dot(w_head_ref[...], feat,
                       preferred_element_type=jnp.float32))      # (C_head, M)

    # ---- adaptive_avg_pool2d(., 1): block-averaging matmul on the MXU -------
    # avg[m, b] = 1/S if column m belongs to batch b else 0, built in-registers
    # (no extra DMA, no unaligned slices, no per-batch reduce trees).
    m_idx = jax.lax.broadcasted_iota(jnp.int32, (M, B), 0)
    b_idx = jax.lax.broadcasted_iota(jnp.int32, (M, B), 1)
    in_blk = (m_idx >= b_idx * S) & (m_idx < (b_idx + 1) * S)
    avg = jnp.where(in_blk, jnp.float32(1.0 / S), jnp.float32(0.0))  # (M, B)
    pooled = jnp.dot(y, avg, preferred_element_type=jnp.float32)     # (C_head, B)

    # ---- fc over concat([pooled, add]) — sublane-aligned concat (C_head%8==0)
    z = jnp.concatenate([pooled, add_ref[...]], axis=0)          # (C_head+add, B)
    b_fc = tail_ref[:, 0:1]                                      # (mid_fc, 1)
    h = _swish(jnp.dot(w_fc_ref[...], z,
                       preferred_element_type=jnp.float32) + b_fc)   # (mid_fc, B)

    # ---- last_fc (out_features == 1): VPU multiply + sublane reduce ---------
    w_last = tail_ref[:, 1:2]                                    # (mid_fc, 1)
    b_last = tail_ref[0:1, 2:3]                                  # (1, 1)
    o_ref[...] = jnp.sum(h * w_last, axis=0, keepdims=True) + b_last   # (1, B)


# ------------------------------ wrapper (JAX) -------------------------------
def _im2col_3x3_s2_t(x_nchw):
    """3x3 / stride-2 / valid patches of the single input channel, as (9, M).

    Layout plumbing only (~3.5 KB at 2x1x16x16).  Row t = 3*i + j holds
    x[b, 0, 2*oh+i, 2*ow+j] at column m = b*OH*OW + oh*OW + ow.
    """
    B, _, H, W = x_nchw.shape
    OH = (H - 3) // 2 + 1
    OW = (W - 3) // 2 + 1
    x2 = x_nchw[:, 0]                             # (B, H, W)
    rows = [x2[:, i:i + 2 * OH:2, j:j + 2 * OW:2].reshape(1, B * OH * OW)
            for i in range(3) for j in range(3)]
    return jnp.concatenate(rows, axis=0)          # (9, B*OH*OW)


@jax.jit
def forward(x, add, w_stem, w_head, w_fc, b_fc, w_last, b_last):
    B = x.shape[0]
    C_stem = w_stem.shape[0]
    mid_fc = w_fc.shape[1]

    patches_t = _im2col_3x3_s2_t(x)                              # (9, M)
    w_taps_cm = w_stem[:, 0].reshape(C_stem, 9)                  # (C_stem, 9)
    add_t = add.T                                                # (add_size, B)
    w_fc_t = w_fc.T                                              # (mid_fc, C_head+add)
    tail = jnp.concatenate(
        [b_fc.reshape(mid_fc, 1),
         w_last.reshape(mid_fc, 1),
         jnp.broadcast_to(b_last.reshape(1, 1), (mid_fc, 1))],
        axis=1)                                                  # (mid_fc, 3)

    vmem = pl.BlockSpec(memory_space=pltpu.MemorySpace.VMEM)
    out_row = pl.pallas_call(
        _fused_kernel,
        out_shape=jax.ShapeDtypeStruct((1, B), jnp.float32),
        in_specs=[vmem] * 6,
        out_specs=vmem,
    )(patches_t, w_taps_cm, w_head, add_t, w_fc_t, tail)
    return out_row.reshape(B, 1)                                 # (B, 1)


# --------------------------- plain-JAX reference ----------------------------
def reference_forward(x, add, w_stem, w_head, w_fc, b_fc, w_last, b_last):
    hi = jax.lax.Precision.HIGHEST
    feat = jax.lax.conv_general_dilated(
        x, w_stem, window_strides=(2, 2), padding="VALID",
        dimension_numbers=("NCHW", "OIHW", "NCHW"), precision=hi)
    feat = _swish(feat)                                    # (B, C_stem, OH, OW)
    y = _swish(jnp.einsum("bchw,dc->bdhw", feat, w_head, precision=hi))
    pooled = jnp.mean(y, axis=(2, 3))                      # (B, C_head)
    z = jnp.concatenate([pooled, add], axis=1)
    h = _swish(jnp.dot(z, w_fc, precision=hi) + b_fc)
    return jnp.dot(h, w_last, precision=hi) + b_last


if __name__ == "__main__":
    key = jax.random.PRNGKey(0)
    B, H, W = 2, 16, 16
    C_STEM, C_HEAD = 8, 32
    ADD_SIZE, MID_FC = 4, 32

    k1, k2, k3, k4, k5, k6, k7 = jax.random.split(key, 7)
    x = jax.random.normal(k1, (B, 1, H, W), jnp.float32)        # NCHW, 1 input channel
    add = jax.random.normal(k2, (B, ADD_SIZE), jnp.float32)

    # Deterministic synthetic parameters (module __init__ shapes, scaled small).
    w_stem = 0.1 * jax.random.normal(k3, (C_STEM, 1, 3, 3), jnp.float32)      # conv_stem
    w_head = 0.1 * jax.random.normal(k4, (C_HEAD, C_STEM), jnp.float32)       # conv_head (1x1)
    w_fc = 0.1 * jax.random.normal(k5, (C_HEAD + ADD_SIZE, MID_FC), jnp.float32)
    b_fc = 0.1 * jax.random.normal(k6, (1, MID_FC), jnp.float32)
    w_last = 0.1 * jax.random.normal(k7, (MID_FC, 1), jnp.float32)
    b_last = jnp.zeros((1, 1), jnp.float32)

    out = forward(x, add, w_stem, w_head, w_fc, b_fc, w_last, b_last)
    out = jax.block_until_ready(out)
    assert out.shape == (B, 1) and out.dtype == jnp.float32

    ref = reference_forward(x, add, w_stem, w_head, w_fc, b_fc, w_last, b_last)
    max_err = float(jnp.max(jnp.abs(out - ref)))
    assert max_err < 5e-3, f"kernel vs reference mismatch: max abs err {max_err}"

    print("KERNEL_OK")
</pallas_src>

<mosaic_0001>
module attributes {stable_mosaic.version = 11 : i64} {
  func.func @_fused_kernel(%arg0: memref<9x98xf32, #tpu.memory_space<vmem>>, %arg1: memref<8x9xf32, #tpu.memory_space<vmem>>, %arg2: memref<32x8xf32, #tpu.memory_space<vmem>>, %arg3: memref<4x2xf32, #tpu.memory_space<vmem>>, %arg4: memref<32x36xf32, #tpu.memory_space<vmem>>, %arg5: memref<32x3xf32, #tpu.memory_space<vmem>>, %arg6: memref<1x2xf32, #tpu.memory_space<vmem>>) attributes {dimension_semantics = [], scalar_prefetch = 0 : i64, scratch_operands = 0 : i64, tpu.core_type = #tpu.core_type<tc>} {
    %c0 = arith.constant 0 : index
    %c0_0 = arith.constant 0 : index
    %0 = vector.load %arg1[%c0, %c0_0] : memref<8x9xf32, #tpu.memory_space<vmem>>, vector<8x9xf32>
    %c0_1 = arith.constant 0 : index
    %c0_2 = arith.constant 0 : index
    %1 = vector.load %arg0[%c0_1, %c0_2] : memref<9x98xf32, #tpu.memory_space<vmem>>, vector<9x98xf32>
    %cst = arith.constant dense<0.000000e+00> : vector<8x98xf32>
    %2 = tpu.matmul %0, %1, %cst {dimension_numbers = #tpu.dot_dimension_numbers<[1], [0], [0], [1], [0, 0, 1, 1], [], []>} : vector<8x9xf32>, vector<9x98xf32>, vector<8x98xf32> -> vector<8x98xf32>
    %3 = arith.negf %2 : vector<8x98xf32>
    %4 = math.exp %3 : vector<8x98xf32>
    %cst_3 = arith.constant 1.000000e+00 : f32
    %5 = vector.broadcast %cst_3 : f32 to vector<8x98xf32>
    %6 = arith.addf %5, %4 : vector<8x98xf32>
    %7 = arith.divf %5, %6 : vector<8x98xf32>
    %8 = arith.mulf %2, %7 : vector<8x98xf32>
    %c0_4 = arith.constant 0 : index
    %c0_5 = arith.constant 0 : index
    %9 = vector.load %arg2[%c0_4, %c0_5] : memref<32x8xf32, #tpu.memory_space<vmem>>, vector<32x8xf32>
    %cst_6 = arith.constant dense<0.000000e+00> : vector<32x98xf32>
    %10 = tpu.matmul %9, %8, %cst_6 {dimension_numbers = #tpu.dot_dimension_numbers<[1], [0], [0], [1], [0, 0, 1, 1], [], []>} : vector<32x8xf32>, vector<8x98xf32>, vector<32x98xf32> -> vector<32x98xf32>
    %11 = arith.negf %10 : vector<32x98xf32>
    %12 = math.exp %11 : vector<32x98xf32>
    %cst_7 = arith.constant 1.000000e+00 : f32
    %13 = vector.broadcast %cst_7 : f32 to vector<32x98xf32>
    %14 = arith.addf %13, %12 : vector<32x98xf32>
    %15 = arith.divf %13, %14 : vector<32x98xf32>
    %16 = arith.mulf %10, %15 : vector<32x98xf32>
    %17 = tpu.iota {dimensions = array<i32: 0>} : vector<98x2xi32>
    %18 = tpu.iota {dimensions = array<i32: 1>} : vector<98x2xi32>
    %c49_i32 = arith.constant 49 : i32
    %19 = vector.broadcast %c49_i32 : i32 to vector<98x2xi32>
    %20 = arith.muli %18, %19 : vector<98x2xi32>
    %21 = arith.cmpi sge, %17, %20 : vector<98x2xi32>
    %c1_i32 = arith.constant 1 : i32
    %22 = vector.broadcast %c1_i32 : i32 to vector<98x2xi32>
    %23 = arith.addi %18, %22 : vector<98x2xi32>
    %c49_i32_8 = arith.constant 49 : i32
    %24 = vector.broadcast %c49_i32_8 : i32 to vector<98x2xi32>
    %25 = arith.muli %23, %24 : vector<98x2xi32>
    %26 = arith.cmpi slt, %17, %25 : vector<98x2xi32>
    %27 = arith.andi %21, %26 : vector<98x2xi1>
    %cst_9 = arith.constant 0.0204081628 : f32
    %cst_10 = arith.constant 0.000000e+00 : f32
    %28 = vector.broadcast %cst_9 : f32 to vector<98x2xf32>
    %29 = vector.broadcast %cst_10 : f32 to vector<98x2xf32>
    %30 = arith.select %27, %28, %29 : vector<98x2xi1>, vector<98x2xf32>
    %cst_11 = arith.constant dense<0.000000e+00> : vector<32x2xf32>
    %31 = tpu.matmul %16, %30, %cst_11 {dimension_numbers = #tpu.dot_dimension_numbers<[1], [0], [0], [1], [0, 0, 1, 1], [], []>} : vector<32x98xf32>, vector<98x2xf32>, vector<32x2xf32> -> vector<32x2xf32>
    %c0_12 = arith.constant 0 : index
    %c0_13 = arith.constant 0 : index
    %32 = vector.load %arg3[%c0_12, %c0_13] : memref<4x2xf32, #tpu.memory_space<vmem>>, vector<4x2xf32>
    %33 = tpu.concatenate %31, %32 in 0 : vector<32x2xf32>, vector<4x2xf32> -> vector<36x2xf32>
    %c0_14 = arith.constant 0 : index
    %c0_15 = arith.constant 0 : index
    %34 = vector.load %arg5[%c0_14, %c0_15] : memref<32x3xf32, #tpu.memory_space<vmem>>, vector<32x1xf32>
    %c0_16 = arith.constant 0 : index
    %c0_17 = arith.constant 0 : index
    %35 = vector.load %arg4[%c0_16, %c0_17] : memref<32x36xf32, #tpu.memory_space<vmem>>, vector<32x36xf32>
    %cst_18 = arith.constant dense<0.000000e+00> : vector<32x2xf32>
    %36 = tpu.matmul %35, %33, %cst_18 {dimension_numbers = #tpu.dot_dimension_numbers<[1], [0], [0], [1], [0, 0, 1, 1], [], []>} : vector<32x36xf32>, vector<36x2xf32>, vector<32x2xf32> -> vector<32x2xf32>
    %37 = vector.broadcast %34 : vector<32x1xf32> to vector<32x2xf32>
    %38 = arith.addf %36, %37 : vector<32x2xf32>
    %39 = arith.negf %38 : vector<32x2xf32>
    %40 = math.exp %39 : vector<32x2xf32>
    %cst_19 = arith.constant 1.000000e+00 : f32
    %41 = vector.broadcast %cst_19 : f32 to vector<32x2xf32>
    %42 = arith.addf %41, %40 : vector<32x2xf32>
    %43 = arith.divf %41, %42 : vector<32x2xf32>
    %44 = arith.mulf %38, %43 : vector<32x2xf32>
    %c0_20 = arith.constant 0 : index
    %c1 = arith.constant 1 : index
    %45 = vector.load %arg5[%c0_20, %c1] : memref<32x3xf32, #tpu.memory_space<vmem>>, vector<32x1xf32>
    %c0_21 = arith.constant 0 : index
    %c2 = arith.constant 2 : index
    %46 = vector.load %arg5[%c0_21, %c2] : memref<32x3xf32, #tpu.memory_space<vmem>>, vector<1x1xf32>
    %47 = vector.broadcast %45 : vector<32x1xf32> to vector<32x2xf32>
    %48 = arith.mulf %44, %47 : vector<32x2xf32>
    %cst_22 = arith.constant dense<0.000000e+00> : vector<2xf32>
    %49 = vector.multi_reduction <add>, %48, %cst_22 [0] : vector<32x2xf32> to vector<2xf32>
    %50 = vector.shape_cast %49 : vector<2xf32> to vector<1x2xf32>
    %51 = vector.broadcast %46 : vector<1x1xf32> to vector<1x2xf32>
    %52 = arith.addf %50, %51 : vector<1x2xf32>
    %c0_23 = arith.constant 0 : index
    %c0_24 = arith.constant 0 : index
    %53 = vector.load %arg6[%c0_23, %c0_24] : memref<1x2xf32, #tpu.memory_space<vmem>>, vector<1x2xf32>
    tpu.vector_store %arg6[%c0_23, %c0_24], %52 {strides = array<i32>} : memref<1x2xf32, #tpu.memory_space<vmem>>, vector<1x2xf32>,
    return
  }
}

</mosaic_0001>

<bundles_post_ra>
// kernel: squeeze.3
= control target key start
LH: loop header
LB: loop body
LE: loop exit
PB: predicated region body
PF: predicated region fallthrough
CT: control target
= control target key end

     0   :  { %vm16_vm0 = vcmask 64512   ;;  %s61_s0 = inlined_call_operand.vmem [shape: f32[8,3,3], index: 0, kind: input, shape index: {}]   ;;  %s62_s1 = inlined_call_operand.vmem [shape: f32[8,9], index: 1, kind: output, shape index: {}]  }
   0x1   :  { %v29_v0 = vld [vmem:[%s61_s0 + $0x8] sm:$0xf]  ;;  %v30_v1 = vld [vmem:[%s61_s0 + $0x4] sm:$0xf]  ;;  %v13_v2 = vld [vmem:[%s61_s0] sm:$0xf] }
   0x2   :  { %8 = vst [vmem:[#allocation0 + $0x10] sm:$0xf] %v29_v0  ;;  %12 = vst [vmem:[#allocation0 + $0x8] sm:$0xf] %v30_v1 }
   0x3   :  { %14 = vst [vmem:[#allocation0] sm:$0xf] %v13_v2 }
   0x9   :  { %v19_v4 = vld [vmem:[#allocation0 + $0x8] sm:$0x7]   ;;  %v24_v5 = vld [vmem:[#allocation0 + $0x10] sm:$0x7]  }
   0xa   :  { %v15_v3 = vld [vmem:[#allocation0] sm:$0x7]   ;;  %31 = vst.msk [vmem:[%s62_s1 + $0x3] sm:$0x7] %vm16_vm0, %v19_v4   ;;  %32 = vst.msk [vmem:[%s62_s1 + $0x6] sm:$0x7] %vm16_vm0, %v24_v5  }
   0xb   :  { %17 = vst.msk [vmem:[%s62_s1] sm:$0x7] %vm16_vm0, %v15_v3  }

// kernel: forward.1
= control target key start
LH: loop header
LB: loop body
LE: loop exit
PB: predicated region body
PF: predicated region fallthrough
CT: control target
= control target key end

     0   :  { %vm31_vm0 = vcmask 1040384   ;;  %v876_v2 = vmov 0.0|0.0   ;;  %vm877_vm1 = vmmov 1   ;;  %vm878_vm3 = vmmov 0   ;;  %s1027_s0 = inlined_call_operand.vmem [shape: f32[9,98], index: 0, kind: input, shape index: {}]   ;;  %s1028_s1 = inlined_call_operand.vmem [shape: f32[8,9], index: 1, kind: input, shape index: {}]   ;;  %s1029_s2 = inlined_call_operand.vmem [shape: f32[32,8], index: 2, kind: input, shape index: {}]   ;;  %s1030_s3 = inlined_call_operand.vmem [shape: f32[4,2], index: 3, kind: input, shape index: {}]   ;;  %s1031_s4 = inlined_call_operand.vmem [shape: f32[32,36], index: 4, kind: input, shape index: {}]   ;;  %s1032_s5 = inlined_call_operand.vmem [shape: f32[32,3], index: 5, kind: input, shape index: {}]   ;;  %s1033_s6 = inlined_call_operand.hbm [shape: f32[1,2], index: 6, kind: output, shape index: {}]  }
   0x1   :  { %v25_v0 = vld [vmem:[%s1027_s0] sm:$0xff]  ;;  %v26_v1 = vld [vmem:[%s1027_s0 + $0x8] sm:$0x1]  ;;  %765 = vmatprep.subr.bf16.mxu0 %v876_v2  ;;  %vm767_vm2 = vmpackc.low %vm31_vm0, %vm877_vm1  ;;  %v879_v4 = vmov 0.0  }
   0x2   :  { %v766_v3 = vpack.c.bf16 %v26_v1, %v25_v0  ;;  %706 = vmatprep.mubr.msk.f32.mxu0 %vm878_vm3, %v879_v4 }
   0x3   :  { %11 = vsyncpa [#allocation3], 0  ;;  %v24_v5 = vld [vmem:[%s1028_s1] sm:$0xff]  ;;  %vm27_vm4 = vcmask 72704   ;;  %vm116_vm5 = vcmask 64512   ;;  %v113_v14 = vld [vmem:[%s1029_s2 + $0x8] sm:$0xff]  ;;  %v242_v17 = vlaneseq }
   0x4   :  { %768 = vmatpush3.bf16.msk.msra.mxu0 %vm767_vm2, %v766_v3  ;;  %v112_v6 = vld [vmem:[%s1029_s2] sm:$0xff]  ;;  %v114_v15 = vld [vmem:[%s1029_s2 + $0x10] sm:$0xff]  ;;  %v115_v16 = vld [vmem:[%s1029_s2 + $0x18] sm:$0xff]  ;;  %v880_v26 = vmov 0.020385742|0.020385742   ;;  %v881_v0 = vmov 0  }
   0x5   :  { %v257_v18 = vand.u32 127, %v242_v17  ;;  %v243_v20 = vshrl.u32 %v242_v17, 7  ;;  %v420_v61 = vld [vmem:[%s1031_s4] sm:$0xff]  ;;  %v418_v63 = vld [vmem:[%s1032_s5 + $0x10] sm:$0xff]  ;;  %810 = vset.pattern.permute.xlu0 %v881_v0  ;;  %811 = vset.pattern.permute.xlu1 %v881_v0  ;;  %v417_v1 = vld [vmem:[%s1032_s5 + $0x8] sm:$0xff]  ;;  %v882_v3 = vmov 1  }
   0x6   :  { %v416_v62 = vld [vmem:[%s1032_s5] sm:$0xff]  ;;  %436 = vperm.xlu1 %811, %v418_v63   ;;  %v419_v2 = vld [vmem:[%s1032_s5 + $0x18] sm:$0xff] }
   0x7   :  { %707 = vmatmul.mubr.msk.f32.vlgmr.msra.gmra.mrb[0].mxu0 %vm27_vm4, %v24_v5  ;;  %v272_v19 = vadd.s32 1, %v257_v18  ;;  %v946_v21 = vmul.u32 49, %v257_v18  ;;  %v244_v23 = vadd.s32 8, %v243_v20  ;;  %v245_v24 = vadd.s32 16, %v243_v20  ;;  %426 = vperm.xlu0 %810, %v416_v62  }
   0x8   :  { %711 = vmatprep.mubr.msk.f32.mxu0 %vm116_vm5, %v112_v6  ;;  %v246_v25 = vadd.s32 24, %v243_v20  ;;  %v247_v27 = vadd.s32 32, %v243_v20  ;;  %v248_v28 = vadd.s32 40, %v243_v20  ;;  %v249_v29 = vadd.s32 48, %v243_v20 }
   0x9   :  { %v948_v22 = vmul.u32 49, %v272_v19  ;;  %vm259_vm6 = vcmp.ge.s32.totalorder %v243_v20, %v946_v21  ;;  %vm260_vm7 = vcmp.ge.s32.totalorder %v244_v23, %v946_v21  ;;  %vm261_vm13 = vcmp.ge.s32.totalorder %v245_v24, %v946_v21 }
   0xa   :  { %vm262_vm14 = vcmp.ge.s32.totalorder %v246_v25, %v946_v21  ;;  %vm263_vm4 = vcmp.ge.s32.totalorder %v247_v27, %v946_v21  ;;  %v250_v30 = vadd.s32 56, %v243_v20  ;;  %v255_v31 = vadd.s32 96, %v243_v20  ;;  %441 = vperm.xlu1 %811, %v419_v2  }
   0xb   :  { %vm274_vm8 = vcmp.lt.s32.totalorder %v243_v20, %v948_v22  ;;  %vm275_vm9 = vcmp.lt.s32.totalorder %v244_v23, %v948_v22  ;;  %vm276_vm15 = vcmp.lt.s32.totalorder %v245_v24, %v948_v22  ;;  %vm277_vm0 = vcmp.lt.s32.totalorder %v246_v25, %v948_v22  ;;  %431 = vperm.xlu0 %810, %v417_v1  }
   0xc   :  { %vm287_vm10 = vmand %vm259_vm6, %vm274_vm8  ;;  %vm278_vm6 = vcmp.lt.s32.totalorder %v247_v27, %v948_v22  ;;  %v251_v32 = vadd.s32 64, %v243_v20  ;;  %v252_v33 = vadd.s32 72, %v243_v20  ;;  %v253_v34 = vadd.s32 80, %v243_v20 }
   0xd   :  { %vm288_vm11 = vmand %vm260_vm7, %vm275_vm9  ;;  %vm279_vm7 = vcmp.lt.s32.totalorder %v248_v28, %v948_v22  ;;  %v254_v35 = vadd.s32 88, %v243_v20  ;;  %v883_v5 = vmov 2  }
   0xe   :  { %vm769_vm12 = vmpackc.low %vm288_vm11, %vm287_vm10  ;;  %vm265_vm11 = vcmp.ge.s32.totalorder %v249_v29, %v946_v21  ;;  %813 = vset.pattern.permute.xlu1 %v882_v3 }
   0xf   :  { %770 = vmatprep.subr.msk.bf16.mxu1 %vm769_vm12, %v880_v26  ;;  %vm289_vm1 = vmand %vm261_vm13, %vm276_vm15  ;;  %vm280_vm13 = vcmp.lt.s32.totalorder %v249_v29, %v948_v22  ;;  %812 = vset.pattern.permute.xlu0 %v882_v3 }
  0x10   :  { %772 = vmatpush3.bf16.msk.msra.mxu1 %vm769_vm12, %v880_v26  ;;  %vm290_vm2 = vmand %vm262_vm14, %vm277_vm0  ;;  %vm266_vm12 = vcmp.ge.s32.totalorder %v250_v30, %v946_v21  ;;  %vm281_vm14 = vcmp.lt.s32.totalorder %v250_v30, %v948_v22  ;;  %580 = vperm.xlu1 %813, %v417_v1  }
  0x11   :  { %vm773_vm3 = vmpackc.low %vm290_vm2, %vm289_vm1  ;;  %vm267_vm2 = vcmp.ge.s32.totalorder %v251_v32, %v946_v21  ;;  %576 = vperm.xlu0 %812, %v416_v62  }
  0x12   :  { %774 = vmatprep.subr.msk.bf16.mxu1 %vm773_vm3, %v880_v26  ;;  %vm291_vm8 = vmand %vm263_vm4, %vm278_vm6  ;;  %vm282_vm4 = vcmp.lt.s32.totalorder %v251_v32, %v948_v22  ;;  %vm271_vm6 = vcmp.ge.s32.totalorder %v255_v31, %v946_v21 }
  0x13   :  { %vm293_vm15 = vmand %vm265_vm11, %vm280_vm13  ;;  %vm270_vm13 = vcmp.ge.s32.totalorder %v254_v35, %v946_v21 }
  0x14   :  { %776 = vmatpush3.bf16.msk.msra.mxu1 %vm773_vm3, %v880_v26  ;;  %vm294_vm0 = vmand %vm266_vm12, %vm281_vm14  ;;  %vm268_vm3 = vcmp.ge.s32.totalorder %v252_v33, %v946_v21  ;;  %vm269_vm12 = vcmp.ge.s32.totalorder %v253_v34, %v946_v21  ;;  %vm284_vm14 = vcmp.lt.s32.totalorder %v253_v34, %v948_v22  ;;  %584 = vperm.xlu1 %813, %v418_v63  }
  0x15   :  { %vm781_vm1 = vmpackc.low %vm294_vm0, %vm293_vm15  ;;  %vm285_vm15 = vcmp.lt.s32.totalorder %v254_v35, %v948_v22  ;;  %588 = vperm.xlu0 %812, %v419_v2  }
  0x16   :  { %vm297_vm0 = vmand %vm269_vm12, %vm284_vm14 }
  0x18   :  { %814 = vset.pattern.permute.xlu1 %v883_v5 }
  0x19   :  { %815 = vset.pattern.permute.xlu0 %v883_v5 }
  0x85   :  { %v437_v17 = vpop.permute.xlu1 %436 }
  0x89   :  { %v442_v23 = vpop.permute.xlu1 %441 }
  0xda   :  { %v101_v7 = vpop.f32.mrb[0].mxu0 }
  0xdb   :  { %v633_v8 = vmul.f32 -1.442695, %v101_v7  ;;  %v708_v9 = vpop.f32.mrb[1].mxu0 }
  0xdd   :  { %816 = vpow2.f32 %v633_v8 }
  0xe7   :  { %v817_v10 = vpop.eup %816 }
  0xe8   :  { %v108_v11 = vadd.f32 1.0, %v817_v10 }
  0xea   :  { %818 = vrcp.f32 %v108_v11 }
  0xf4   :  { %v819_v12 = vpop.eup %818 }
  0xf5   :  { %v111_v13 = vmul.f32 %v819_v12, %v101_v7  ;;  %v415_v12 = vld [vmem:[%s1030_s3] sm:$0xf]  ;;  %s884_s3 = smov [#allocation2]  }
  0xf7   :  { %709 = vmatprep.subr.mxu0 %v111_v13 }
  0xf8   :  { %710 = vmatpush3.msra.mxu0 %v111_v13  ;;  %v421_v13 = vld [vmem:[%s1031_s4 + $0x8] sm:$0xff] }
  0xf9   :  { %712 = vmatmul.mubr.msk.f32.vlgmr.msra.gmra.mrb[2].mxu0 %vm116_vm5, %v113_v14  ;;  %v422_v14 = vld [vmem:[%s1031_s4 + $0x10] sm:$0xff] }
  0xfa   :  { %714 = vmatprep.mubr.msk.f32.mxu0 %vm116_vm5, %v114_v15  ;;  %v423_v15 = vld [vmem:[%s1031_s4 + $0x18] sm:$0xff]  ;;  %s623_s4 = sshll.u32 %s884_s3, 4  ;;  %s624_s4 = int_to_ptr.vmem [resolvable:$true] %s623_s4 }
  0xfb   :  { %s852_s27 = scalar_lea.vmem %s624_s4, 16  ;;  %s856_s0 = scalar_lea.vmem %s624_s4, 32 }
  0xfc   :  { %p853_p0 = scmp.ne.s32.totalorder %s624_s4, %s852_s27  ;;  %p857_p1 = scmp.lt.s32.totalorder %s624_s4, %s624_s4 }
  0xfd   :  { %715 = vmatmul.mubr.msk.f32.gmra.mrb[4].mxu0 %vm116_vm5, %v115_v16  ;;  %vm264_vm5 = vcmp.ge.s32.totalorder %v248_v28, %v946_v21  ;;  %v427_v16 = vpop.permute.xlu0 %426  ;;  %p858_p2 = scmp.lt.s32.totalorder %s856_s0, %s852_s27 }
  0xfe   :  { %vm292_vm9 = vmand %vm264_vm5, %vm279_vm7  ;;  %vm283_vm5 = vcmp.lt.s32.totalorder %v252_v33, %v948_v22  ;;  %vm286_vm7 = vcmp.lt.s32.totalorder %v255_v31, %v948_v22 }
  0xff   :  { %vm777_vm10 = vmpackc.low %vm292_vm9, %vm291_vm8  ;;  %p859_p3 = por %p858_p2, %p857_p1 }
 0x100   :  { %778 = vmatprep.subr.msk.bf16.mxu1 %vm777_vm10, %v880_v26  ;;  %vm295_vm8 = vmand %vm267_vm2, %vm282_vm4  ;;  %vm313_vm4 = vcmask 801792  }
 0x101   :  { %780 = vmatpush3.bf16.msk.msra.mxu1 %vm777_vm10, %v880_v26  ;;  %vm296_vm9 = vmand %vm268_vm3, %vm283_vm5  ;;  %vm326_vm3 = vcmask 1041408   ;;  %vm444_vm5 = vcmask 293888   ;;  %v432_v18 = vpop.permute.xlu0 %431  ;;  %p860_p4 = pnand %p859_p3, %p853_p0 }
 0x102   :  { %782 = vmatprep.subr.msk.bf16.mxu1 %vm781_vm1, %v880_v26  ;;  %vm785_vm10 = vmpackc.low %vm296_vm9, %vm295_vm8  ;;  %759 = vmatprep.mubr.msk.f32.mxu0 %vm444_vm5, %v420_v61  ;;  %vm615_vm8 = vcmask 8192  }
 0x103   :  { %vm299_vm11 = vmand %vm271_vm6, %vm286_vm7  ;;  %vm457_vm6 = vcmask 1043456   ;;  %vm595_vm7 = vcmask 15360  }
 0x104   :  { %v312_v36 = vsel %vm299_vm11, 0.020408163, %v879_v4  ;;  %v574_v4 = vld [vmem:[%s1032_s5] sm:$0x1] }
 0x105   :  { %784 = vmatpush3.bf16.msk.msra.mxu1 %vm781_vm1, %v880_v26  ;;  %vm298_vm1 = vmand %vm270_vm13, %vm285_vm15  ;;  %611 = vperm.xlu1 %814, %v574_v4  }
 0x106   :  { %786 = vmatprep.subr.msk.bf16.mxu1 %vm785_vm10, %v880_v26  ;;  %vm789_vm2 = vmpackc.low %vm298_vm1, %vm297_vm0 }
 0x109   :  { %788 = vmatpush3.bf16.msk.msra.mxu1 %vm785_vm10, %v880_v26 }
 0x10a   :  { %790 = vmatprep.subr.msk.bf16.mxu1 %vm789_vm2, %v880_v26 }
 0x10d   :  { %792 = vmatpush3.bf16.msk.msra.mxu1 %vm789_vm2, %v880_v26 }
 0x10e   :  { %741 = vmatprep.subr.msk.mxu1 %vm326_vm3, %v312_v36 }
 0x111   :  { %742 = vmatpush3.msk.msra.mxu1 %vm326_vm3, %v312_v36 }
 0x1cc   :  { %v713_v37 = vpop.f32.mrb[2].mxu0 }
 0x1cd   :  { %v639_v38 = vmul.f32 -1.442695, %v713_v37  ;;  %v195_v39 = vpop.f32.mrb[3].mxu0 }
 0x1ce   :  { %v638_v40 = vmul.f32 -1.442695, %v195_v39 }
 0x1cf   :  { %820 = vpow2.f32 %v639_v38 }
 0x1d0   :  { %822 = vpow2.f32 %v638_v40  ;;  %v716_v41 = vpop.f32.mrb[4].mxu0  ;;  %v577_v40 = vpop.permute.xlu0 %576 }
 0x1d1   :  { %v641_v42 = vmul.f32 -1.442695, %v716_v41  ;;  %v205_v43 = vpop.f32.mrb[5].mxu0 }
 0x1d2   :  { %v640_v44 = vmul.f32 -1.442695, %v205_v43 }
 0x1d3   :  { %824 = vpow2.f32 %v641_v42 }
 0x1d4   :  { %826 = vpow2.f32 %v640_v44 }
 0x1d9   :  { %v821_v45 = vpop.eup %820 }
 0x1da   :  { %v823_v46 = vpop.eup %822  ;;  %v227_v47 = vadd.f32 1.0, %v821_v45 }
 0x1db   :  { %v226_v48 = vadd.f32 1.0, %v823_v46 }
 0x1dc   :  { %828 = vrcp.f32 %v227_v47 }
 0x1dd   :  { %v825_v49 = vpop.eup %824  ;;  %830 = vrcp.f32 %v226_v48 }
 0x1de   :  { %v827_v50 = vpop.eup %826  ;;  %v229_v51 = vadd.f32 1.0, %v825_v49 }
 0x1df   :  { %v228_v52 = vadd.f32 1.0, %v827_v50 }
 0x1e0   :  { %832 = vrcp.f32 %v229_v51  ;;  %v589_v51 = vpop.permute.xlu0 %588 }
 0x1e1   :  { %834 = vrcp.f32 %v228_v52 }
 0x1e6   :  { %v829_v53 = vpop.eup %828 }
 0x1e7   :  { %v831_v54 = vpop.eup %830  ;;  %v239_v56 = vmul.f32 %v829_v53, %v713_v37 }
 0x1e8   :  { %v238_v55 = vmul.f32 %v831_v54, %v195_v39 }
 0x1ea   :  { %v833_v57 = vpop.eup %832  ;;  %743 = vmatprep.mubr.msk.f32.mxu1 %vm313_vm4, %v238_v55 }
 0x1eb   :  { %v835_v58 = vpop.eup %834  ;;  %744 = vmatmul.mubr.msk.f32.vlgmr.msra.gmra.mrb[0].mxu1 %vm313_vm4, %v239_v56  ;;  %v241_v60 = vmul.f32 %v833_v57, %v716_v41 }
 0x1ec   :  { %v240_v59 = vmul.f32 %v835_v58, %v205_v43  ;;  %v581_v43 = vpop.permute.xlu1 %580 }
 0x1ee   :  { %746 = vmatprep.mubr.msk.f32.mxu1 %vm313_vm4, %v240_v59 }
 0x1ef   :  { %747 = vmatmul.mubr.msk.f32.gmra.mrb[2].mxu1 %vm313_vm4, %v241_v60 }
 0x1f0   :  { %v585_v56 = vpop.permute.xlu1 %584 }
 0x1f4   :  { %v612_v4 = vpop.permute.xlu1 %611 }
 0x2be   :  { %v745_v6 = vpop.f32.mrb[0].mxu1 }
 0x2bf   :  { %v396_v7 = vpop.f32.mrb[1].mxu1 }
 0x2c0   :  { %v793_v8 = vpack.c.bf16 %v745_v6, %v396_v7 }
 0x2c2   :  { %v748_v9 = vpop.f32.mrb[2].mxu1  ;;  %794 = vmatprep.subr.bf16.mxu0 %v793_v8 }
 0x2c3   :  { %v406_v10 = vpop.f32.mrb[3].mxu1  ;;  %796 = vmatpush3.bf16.msra.mxu0 %v793_v8 }
 0x2c4   :  { %v797_v11 = vpack.c.bf16 %v748_v9, %v406_v10 }
 0x2c6   :  { %798 = vmatprep.subr.bf16.mxu0 %v797_v11 }
 0x2c7   :  { %800 = vmatpush3.bf16.msra.mxu0 %v797_v11 }
 0x2c8   :  { %757 = vmatprep.subr.msk.mxu0 %vm457_vm6, %v415_v12 }
 0x2cb   :  { %758 = vmatpush3.msk.msra.mxu0 %vm457_vm6, %v415_v12 }
 0x2cc   :  { %760 = vmatmul.mubr.msk.f32.vlgmr.msra.gmra.mrb[6].mxu0 %vm444_vm5, %v421_v13 }
 0x2cd   :  { %762 = vmatprep.mubr.msk.f32.mxu0 %vm444_vm5, %v422_v14 }
 0x2d0   :  { %763 = vmatmul.mubr.msk.f32.gmra.mrb[8].mxu0 %vm444_vm5, %v423_v15 }
 0x39f   :  { %v761_v19 = vpop.f32.mrb[6].mxu0 }
 0x3a0   :  { %v533_v20 = vadd.f32 %v761_v19, %v432_v18  ;;  %v527_v21 = vpop.f32.mrb[7].mxu0 }
 0x3a1   :  { %v528_v22 = vadd.f32 %v527_v21, %v427_v16 }
 0x3a2   :  { %v665_v24 = vmul.f32 -1.442695, %v533_v20 }
 0x3a3   :  { %v664_v25 = vmul.f32 -1.442695, %v528_v22  ;;  %v764_v26 = vpop.f32.mrb[8].mxu0 }
 0x3a4   :  { %836 = vpow2.f32 %v665_v24  ;;  %v543_v27 = vadd.f32 %v764_v26, %v442_v23  ;;  %v537_v28 = vpop.f32.mrb[9].mxu0 }
 0x3a5   :  { %838 = vpow2.f32 %v664_v25  ;;  %v538_v29 = vadd.f32 %v537_v28, %v437_v17 }
 0x3a6   :  { %v667_v30 = vmul.f32 -1.442695, %v543_v27 }
 0x3a7   :  { %v666_v31 = vmul.f32 -1.442695, %v538_v29 }
 0x3a8   :  { %840 = vpow2.f32 %v667_v30 }
 0x3a9   :  { %842 = vpow2.f32 %v666_v31 }
 0x3ae   :  { %v837_v32 = vpop.eup %836 }
 0x3af   :  { %v839_v33 = vpop.eup %838  ;;  %v559_v34 = vadd.f32 1.0, %v837_v32 }
 0x3b0   :  { %v558_v35 = vadd.f32 1.0, %v839_v33 }
 0x3b1   :  { %844 = vrcp.f32 %v559_v34 }
 0x3b2   :  { %v841_v36 = vpop.eup %840  ;;  %846 = vrcp.f32 %v558_v35 }
 0x3b3   :  { %v843_v37 = vpop.eup %842  ;;  %v561_v38 = vadd.f32 1.0, %v841_v36 }
 0x3b4   :  { %v560_v39 = vadd.f32 1.0, %v843_v37 }
 0x3b5   :  { %848 = vrcp.f32 %v561_v38 }
 0x3b6   :  { %850 = vrcp.f32 %v560_v39 }
 0x3bb   :  { %v845_v41 = vpop.eup %844 }
 0x3bc   :  { %v847_v42 = vpop.eup %846  ;;  %v571_v44 = vmul.f32 %v845_v41, %v533_v20 }
 0x3bd   :  { %v570_v45 = vmul.f32 %v847_v42, %v528_v22 }
 0x3be   :  { %v592_v46 = vmul.f32 %v581_v43, %v571_v44 }
 0x3bf   :  { %v849_v47 = vpop.eup %848  ;;  %v591_v48 = vmul.f32 %v577_v40, %v570_v45 }
 0x3c0   :  { %v851_v49 = vpop.eup %850  ;;  %v597_v50 = vsel %vm595_vm7, %v592_v46, 0.0  ;;  %v573_v52 = vmul.f32 %v849_v47, %v543_v27 }
 0x3c1   :  { %v596_v53 = vsel %vm595_vm7, %v591_v48, 0.0  ;;  %v572_v54 = vmul.f32 %v851_v49, %v538_v29 }
 0x3c2   :  { %v598_v55 = vadd.f32 %v597_v50, %v596_v53  ;;  %v594_v58 = vmul.f32 %v589_v51, %v573_v52 }
 0x3c3   :  { %v593_v57 = vmul.f32 %v585_v56, %v572_v54 }
 0x3c4   :  { %v601_v61 = vsel %vm595_vm7, %v594_v58, 0.0 }
 0x3c5   :  { %v599_v59 = vsel %vm595_vm7, %v593_v57, 0.0 }
 0x3c6   :  { %v600_v60 = vadd.f32 %v599_v59, %v598_v55 }
 0x3c8   :  { %v602_v62 = vadd.f32 %v601_v61, %v600_v60 }
 0x3ca   :  { %v603_v63 = vrot.slane %v602_v62, 4 }
 0x3cc   :  { %v604_v0 = vadd.f32 %v603_v63, %v602_v62 }
 0x3ce   :  { %v605_v1 = vrot.slane %v604_v0, 2 }
 0x3d0   :  { %v606_v2 = vadd.f32 %v605_v1, %v604_v0 }
 0x3d2   :  { %v607_v3 = vrot.slane %v606_v2, 1 }
 0x3d4   :  { %v608_v5 = vadd.f32 %v607_v3, %v606_v2 }
 0x3d6   :  { %v614_v6 = vadd.f32 %v612_v4, %v608_v5 }
 0x3d8   :  { %616 = vst.msk [vmem:[#allocation2] sm:$0x1] %vm615_vm8, %v614_v6 }
 0x3d9   :  { %863 = shalt.err (!%p860_p4)
}
 0x3da   :  { %s864_s29 = scalar_lea.hbm %s1033_s6, 16 }
 0x3db   :  { %p865_p5 = scmp.ne.s32.totalorder %s1033_s6, %s864_s29  ;;  %p868_p6 = scmp.lt.u32.totalorder %s864_s29, %s1033_s6 }
 0x3dd   :  { %p870_p7 = pnand %p868_p6, %p865_p5 }
 0x3df   :  { %873 = shalt.err (!%p870_p7)
}
 0x3e0   :  { %626 = dma.vmem_to_hbm [thread:$0]  %s624_s4, 16, %s1033_s6, [#allocation3]  }
 0x3e1   :  { %874 = dma.done.wait [#allocation3], 16  }
 0x3e2   :  { %875 = vsyncadd [#allocation3], 4294967280 }
 0x3e3   :  { %630 = vsyncpa [#allocation3], 1 }

</bundles_post_ra>
